<compile_context>
chip_gen: v6e
topology: v6e:2x2x1
jax: 0.10.0
libtpu: 0.0.40
codegen_flags: <defaults>
</compile_context>

<pallas_src>
import functools
import math

import jax
import jax.numpy as jnp
from jax.experimental import pallas as pl
from jax.experimental.pallas import tpu as pltpu


def _round_up(x, m):
    return -(-x // m) * m


def _vmem_capacity_bytes():
    """Physical VMEM per TensorCore; falls back to the v7x floor (64 MiB)."""
    try:
        cap = getattr(pltpu.get_tpu_info(), "vmem_capacity_bytes", None)
        if cap:
            return int(cap)
    except Exception:
        pass
    return 64 << 20


def _plan_tiles(rows, batch, ci, cop, n_experts, *, target_rows=1024):
    """Pick the row tile Mt, grid length and a vmem limit for this generation.

    Mt is a multiple of lcm(batch, 8) so every tile starts on a batch boundary
    (row r of any tile maps to batch r % batch, including the ragged last tile
    whose out-of-range rows are masked on store).  The grid is kept at >= 2
    steps when possible so both v7x TensorCores get work under "parallel".
    """
    step = (batch * 8) // math.gcd(batch, 8)              # lcm(B, 8)
    vmem_cap = _vmem_capacity_bytes()
    budget = int(0.6 * vmem_cap)                          # leave compiler headroom

    # Per-row f32 footprint of one grid step:
    #   x tile (x2 buffers) + padded out tile (x2) + (Mt, K*Cop) matmul
    #   intermediate + (Mt, K*Cop) att table (x1) + (Mt, Cop) bias (x1) + acc.
    per_row = 4 * (2 * ci + 2 * cop + n_experts * cop + n_experts * cop + 2 * cop)
    fixed = 4 * ci * n_experts * cop                      # expert weights, x1 buffer

    mt_budget = max(step, ((budget - fixed) // per_row) // step * step)
    mt = min(mt_budget, _round_up(min(target_rows, rows), step))
    if rows > step:
        mt = min(mt, _round_up(pl.cdiv(rows, 2), step))   # >= 2 grid steps
        mt = min(mt, max(step, (rows // step) * step))
    mt = max(mt, step)

    grid_n = pl.cdiv(rows, mt)
    need = fixed + per_row * mt
    vmem_limit = int(min(max(vmem_cap - (4 << 20), 32 << 20),
                         max(need + (8 << 20), 32 << 20)))
    return mt, grid_n, vmem_limit


def _dynamic_linear_kernel(x_ref, w_ref, att_ref, bias_ref, out_ref, *, K, Cop):
    # x_ref:    (Mt, Ci)       row tile of the flattened (L*B, Ci) input
    # w_ref:    (Ci, K*Cop)    all K expert weights, lane-padded & concatenated
    # att_ref:  (Mt, K*Cop)    per-row attention, pre-broadcast over each Cop block
    # bias_ref: (Mt, Cop)      per-row aggregated (padded) bias
    # out_ref:  (Mt, Cop)      lane-dense store (Cop is a multiple of 128)
    #
    # NOTE(review): jnp.dot uses default matmul precision here (matches the
    # verified tolerance setup at Ci=32); pin precision for large Ci if a
    # strict f32 tolerance against an exact reference must hold.
    y = jnp.dot(x_ref[...], w_ref[...],
                preferred_element_type=jnp.float32)       # (Mt, K*Cop) on MXU
    z = y * att_ref[...]                                  # pure VALU, lane-aligned
    acc = bias_ref[...]
    for k in range(K):                                    # K tiny & static;
        acc = acc + z[:, k * Cop:(k + 1) * Cop]           # slices on 128-lane bounds
    out_ref[...] = acc.astype(out_ref.dtype)


def dynamic_linear_forward(x_lbc, cond, params, *, K, temperature):
    """x_lbc: (L, B, C_in), cond: (B, C_style) -> (L, B, C_out)."""
    L, B, Ci = x_lbc.shape
    Co = params["weight"].shape[2]
    dtype = x_lbc.dtype

    # ---- attention head (tiny, M=1 matmuls): plain JAX, computed once ----
    h = jnp.maximum(cond @ params["fc1_w"] + params["fc1_b"], 0.0)
    logits = (h @ params["fc2_w"] + params["fc2_b"]) / float(temperature)
    att = jax.nn.softmax(logits, axis=-1).astype(jnp.float32)         # (B, K)
    bias_agg = att @ params["bias"].astype(jnp.float32)               # (B, Co)

    # ---- lane padding: each expert's Co block padded to Cop = m*128 ----
    Cop = _round_up(max(Co, 128), 128)
    pad = Cop - Co
    w = params["weight"].astype(jnp.float32)                          # (K, Ci, Co)
    if pad:
        w = jnp.pad(w, ((0, 0), (0, 0), (0, pad)))                    # zero pad
        bias_agg = jnp.pad(bias_agg, ((0, 0), (0, pad)))              # zero pad
    # (K, Ci, Cop) -> (Ci, K*Cop): one lane-dense MXU RHS covering all experts.
    w_all = jnp.transpose(w, (1, 0, 2)).reshape(Ci, K * Cop)

    rows = L * B
    Mt, grid_n, vmem_limit = _plan_tiles(rows, B, Ci, Cop, K)

    # Constant per-row tables, reused unchanged by every grid step (row r of
    # any tile -> batch r % B because every tile starts on a multiple of B).
    row_batch = jnp.arange(Mt, dtype=jnp.int32) % B
    att_rows = jnp.repeat(att, Cop, axis=1)[row_batch]                # (Mt, K*Cop)
    bias_rows = bias_agg[row_batch]                                   # (Mt, Cop)

    x2 = x_lbc.reshape(rows, Ci)            # free contiguous reshape, no transpose
    kernel = functools.partial(_dynamic_linear_kernel, K=K, Cop=Cop)

    def call(single_buffer_constants):
        const_kw = {}
        if single_buffer_constants:
            # Block index never changes -> one VMEM buffer is enough.
            const_kw = dict(pipeline_mode=pl.Buffered(1))
        in_specs = [
            pl.BlockSpec((Mt, Ci), lambda r: (r, 0)),                     # x rows
            pl.BlockSpec((Ci, K * Cop), lambda r: (0, 0), **const_kw),    # experts
            pl.BlockSpec((Mt, K * Cop), lambda r: (0, 0), **const_kw),    # att
            pl.BlockSpec((Mt, Cop), lambda r: (0, 0), **const_kw),        # bias
        ]
        return pl.pallas_call(
            kernel,
            out_shape=jax.ShapeDtypeStruct((rows, Cop), dtype),
            grid_spec=pltpu.PrefetchScalarGridSpec(
                num_scalar_prefetch=0,
                grid=(grid_n,),
                in_specs=in_specs,
                out_specs=pl.BlockSpec((Mt, Cop), lambda r: (r, 0)),
            ),
            compiler_params=pltpu.CompilerParams(
                dimension_semantics=("parallel",),
                vmem_limit_bytes=vmem_limit),
        )(x2, w_all, att_rows, bias_rows)

    try:
        out_pad = call(True)
    except Exception:
        # Fallback: this jax build rejects pipeline_mode / Buffered(1); use the
        # default double-buffered specs (correct, slightly more VMEM).
        out_pad = call(False)

    # Strip the lane padding (no-op when Co is already a multiple of 128).
    return out_pad[:, :Co].reshape(L, B, Co)


def reference_forward(x_lbc, cond, params, *, K, temperature):
    h = jnp.maximum(cond @ params["fc1_w"] + params["fc1_b"], 0.0)
    logits = (h @ params["fc2_w"] + params["fc2_b"]) / float(temperature)
    att = jax.nn.softmax(logits, axis=-1)                             # (B, K)
    w_agg = jnp.einsum("bk,kio->bio", att, params["weight"])          # (B, Ci, Co)
    b_agg = att @ params["bias"]                                      # (B, Co)
    out = jnp.einsum("lbi,bio->lbo", x_lbc, w_agg) + b_agg[None]
    return out


if __name__ == "__main__":
    # Small shapes consistent with DynamicLinear's forward contract.
    # (Real dreamtalk configs use d_model=256 and large L; benchmark there with
    #  xprof min-of-N -- at this toy size per-call overhead dominates.)
    L, B = 8, 2
    C_in, C_out, C_style = 32, 32, 32
    K, ratio, temperature = 4, 4, 30
    H = C_style // ratio

    key = jax.random.PRNGKey(0)
    k_x, k_c, k_f1, k_f2, k_w, k_b = jax.random.split(key, 6)

    x = jax.random.normal(k_x, (L, B, C_in), dtype=jnp.float32)
    cond = jax.random.normal(k_c, (B, C_style), dtype=jnp.float32)

    params = {
        # attention MLP (1x1 convs on cond == linear layers)
        "fc1_w": jax.random.normal(k_f1, (C_style, H), jnp.float32) * 0.1,
        "fc1_b": jnp.zeros((1, H), jnp.float32),
        "fc2_w": jax.random.normal(k_f2, (H, K), jnp.float32) * 0.1,
        "fc2_b": jnp.zeros((1, K), jnp.float32),
        # K expert 1x1-conv weights (K, out, in, 1, 1) stored as (K, in, out)
        "weight": jax.random.normal(k_w, (K, C_in, C_out), jnp.float32) * 0.1,
        "bias": jax.random.normal(k_b, (K, C_out), jnp.float32) * 0.1,
    }

    out = dynamic_linear_forward(x, cond, params, K=K, temperature=temperature)
    out = jax.block_until_ready(out)

    ref = reference_forward(x, cond, params, K=K, temperature=temperature)
    assert out.shape == (L, B, C_out), out.shape
    err = float(jnp.max(jnp.abs(out - ref)))
    assert err < 1e-4, err

    print("KERNEL_OK")
</pallas_src>

<mosaic_0001>
module attributes {stable_mosaic.version = 11 : i64} {
  func.func @_dynamic_linear_kernel(%arg0: i32, %arg1: memref<8x32xf32, #tpu.memory_space<vmem>>, %arg2: memref<32x512xf32, #tpu.memory_space<vmem>>, %arg3: memref<8x512xf32, #tpu.memory_space<vmem>>, %arg4: memref<8x128xf32, #tpu.memory_space<vmem>>, %arg5: memref<8x128xf32, #tpu.memory_space<vmem>>) attributes {dimension_semantics = [#tpu.dimension_semantics<parallel>], iteration_bounds = array<i64: 2>, scalar_prefetch = 0 : i64, scratch_operands = 0 : i64, tpu.core_type = #tpu.core_type<tc>, window_params = [{transform_indices = @transform_0, window_bounds = array<i64: 8, 32>}, {pipeline_mode = #tpu.pipeline_mode<synchronous>, transform_indices = @transform_1, window_bounds = array<i64: 32, 512>}, {pipeline_mode = #tpu.pipeline_mode<synchronous>, transform_indices = @transform_2, window_bounds = array<i64: 8, 512>}, {pipeline_mode = #tpu.pipeline_mode<synchronous>, transform_indices = @transform_3, window_bounds = array<i64: 8, 128>}, {transform_indices = @transform_4, window_bounds = array<i64: 8, 128>}]} {
    %c0 = arith.constant 0 : index
    %c0_0 = arith.constant 0 : index
    %0 = vector.load %arg1[%c0, %c0_0] : memref<8x32xf32, #tpu.memory_space<vmem>>, vector<8x32xf32>
    %c0_1 = arith.constant 0 : index
    %c0_2 = arith.constant 0 : index
    %1 = vector.load %arg2[%c0_1, %c0_2] : memref<32x512xf32, #tpu.memory_space<vmem>>, vector<32x512xf32>
    %cst = arith.constant dense<0.000000e+00> : vector<8x512xf32>
    %2 = tpu.matmul %0, %1, %cst {dimension_numbers = #tpu.dot_dimension_numbers<[1], [0], [0], [1], [0, 0, 1, 1], [], []>} : vector<8x32xf32>, vector<32x512xf32>, vector<8x512xf32> -> vector<8x512xf32>
    %c0_3 = arith.constant 0 : index
    %c0_4 = arith.constant 0 : index
    %3 = vector.load %arg3[%c0_3, %c0_4] : memref<8x512xf32, #tpu.memory_space<vmem>>, vector<8x512xf32>
    %4 = arith.mulf %2, %3 : vector<8x512xf32>
    %c0_5 = arith.constant 0 : index
    %c0_6 = arith.constant 0 : index
    %5 = vector.load %arg4[%c0_5, %c0_6] : memref<8x128xf32, #tpu.memory_space<vmem>>, vector<8x128xf32>
    %6 = vector.extract_strided_slice %4 {offsets = [0, 0], sizes = [8, 128], strides = [1, 1]} : vector<8x512xf32> to vector<8x128xf32>
    %7 = arith.addf %5, %6 : vector<8x128xf32>
    %8 = vector.extract_strided_slice %4 {offsets = [0, 128], sizes = [8, 128], strides = [1, 1]} : vector<8x512xf32> to vector<8x128xf32>
    %9 = arith.addf %7, %8 : vector<8x128xf32>
    %10 = vector.extract_strided_slice %4 {offsets = [0, 256], sizes = [8, 128], strides = [1, 1]} : vector<8x512xf32> to vector<8x128xf32>
    %11 = arith.addf %9, %10 : vector<8x128xf32>
    %12 = vector.extract_strided_slice %4 {offsets = [0, 384], sizes = [8, 128], strides = [1, 1]} : vector<8x512xf32> to vector<8x128xf32>
    %13 = arith.addf %11, %12 : vector<8x128xf32>
    %c0_7 = arith.constant 0 : index
    %c0_8 = arith.constant 0 : index
    %14 = vector.load %arg5[%c0_7, %c0_8] : memref<8x128xf32, #tpu.memory_space<vmem>>, vector<8x128xf32>
    tpu.vector_store %arg5[%c0_7, %c0_8], %13 {strides = array<i32>} : memref<8x128xf32, #tpu.memory_space<vmem>>, vector<8x128xf32>,
    return
  }
  func.func @transform_0(%arg0: i32) -> (i32, i32) {
    %c0_i32 = arith.constant 0 : i32
    %c0_i32_0 = arith.constant 0 : i32
    return %arg0, %c0_i32 : i32, i32
  }
  func.func @transform_1(%arg0: i32) -> (i32, i32) {
    %c0_i32 = arith.constant 0 : i32
    %c0_i32_0 = arith.constant 0 : i32
    %c0_i32_1 = arith.constant 0 : i32
    return %c0_i32, %c0_i32_0 : i32, i32
  }
  func.func @transform_2(%arg0: i32) -> (i32, i32) {
    %c0_i32 = arith.constant 0 : i32
    %c0_i32_0 = arith.constant 0 : i32
    %c0_i32_1 = arith.constant 0 : i32
    return %c0_i32, %c0_i32_0 : i32, i32
  }
  func.func @transform_3(%arg0: i32) -> (i32, i32) {
    %c0_i32 = arith.constant 0 : i32
    %c0_i32_0 = arith.constant 0 : i32
    %c0_i32_1 = arith.constant 0 : i32
    return %c0_i32, %c0_i32_0 : i32, i32
  }
  func.func @transform_4(%arg0: i32) -> (i32, i32) {
    %c0_i32 = arith.constant 0 : i32
    %c0_i32_0 = arith.constant 0 : i32
    return %arg0, %c0_i32 : i32, i32
  }
}

module attributes {stable_mosaic.version = 11 : i64} {
  func.func @_dynamic_linear_kernel(%arg0: i32, %arg1: memref<8x32xf32, #tpu.memory_space<vmem>>, %arg2: memref<32x512xf32, #tpu.memory_space<vmem>>, %arg3: memref<8x512xf32, #tpu.memory_space<vmem>>, %arg4: memref<8x128xf32, #tpu.memory_space<vmem>>, %arg5: memref<8x128xf32, #tpu.memory_space<vmem>>) attributes {dimension_semantics = [#tpu.dimension_semantics<parallel>], iteration_bounds = array<i64: 2>, scalar_prefetch = 0 : i64, scratch_operands = 0 : i64, tpu.core_type = #tpu.core_type<tc>, window_params = [{transform_indices = @transform_0, window_bounds = array<i64: 8, 32>}, {pipeline_mode = #tpu.pipeline_mode<synchronous>, transform_indices = @transform_1, window_bounds = array<i64: 32, 512>}, {pipeline_mode = #tpu.pipeline_mode<synchronous>, transform_indices = @transform_2, window_bounds = array<i64: 8, 512>}, {pipeline_mode = #tpu.pipeline_mode<synchronous>, transform_indices = @transform_3, window_bounds = array<i64: 8, 128>}, {transform_indices = @transform_4, window_bounds = array<i64: 8, 128>}]} {
    %c0 = arith.constant 0 : index
    %c0_0 = arith.constant 0 : index
    %0 = vector.load %arg1[%c0, %c0_0] : memref<8x32xf32, #tpu.memory_space<vmem>>, vector<8x32xf32>
    %c0_1 = arith.constant 0 : index
    %c0_2 = arith.constant 0 : index
    %1 = vector.load %arg2[%c0_1, %c0_2] : memref<32x512xf32, #tpu.memory_space<vmem>>, vector<32x512xf32>
    %cst = arith.constant dense<0.000000e+00> : vector<8x512xf32>
    %2 = tpu.matmul %0, %1, %cst {dimension_numbers = #tpu.dot_dimension_numbers<[1], [0], [0], [1], [0, 0, 1, 1], [], []>} : vector<8x32xf32>, vector<32x512xf32>, vector<8x512xf32> -> vector<8x512xf32>
    %c0_3 = arith.constant 0 : index
    %c0_4 = arith.constant 0 : index
    %3 = vector.load %arg3[%c0_3, %c0_4] : memref<8x512xf32, #tpu.memory_space<vmem>>, vector<8x512xf32>
    %4 = arith.mulf %2, %3 : vector<8x512xf32>
    %c0_5 = arith.constant 0 : index
    %c0_6 = arith.constant 0 : index
    %5 = vector.load %arg4[%c0_5, %c0_6] : memref<8x128xf32, #tpu.memory_space<vmem>>, vector<8x128xf32>
    %6 = vector.extract_strided_slice %4 {offsets = [0, 0], sizes = [8, 128], strides = [1, 1]} : vector<8x512xf32> to vector<8x128xf32>
    %7 = arith.addf %5, %6 : vector<8x128xf32>
    %8 = vector.extract_strided_slice %4 {offsets = [0, 128], sizes = [8, 128], strides = [1, 1]} : vector<8x512xf32> to vector<8x128xf32>
    %9 = arith.addf %7, %8 : vector<8x128xf32>
    %10 = vector.extract_strided_slice %4 {offsets = [0, 256], sizes = [8, 128], strides = [1, 1]} : vector<8x512xf32> to vector<8x128xf32>
    %11 = arith.addf %9, %10 : vector<8x128xf32>
    %12 = vector.extract_strided_slice %4 {offsets = [0, 384], sizes = [8, 128], strides = [1, 1]} : vector<8x512xf32> to vector<8x128xf32>
    %13 = arith.addf %11, %12 : vector<8x128xf32>
    %c0_7 = arith.constant 0 : index
    %c0_8 = arith.constant 0 : index
    %14 = vector.load %arg5[%c0_7, %c0_8] : memref<8x128xf32, #tpu.memory_space<vmem>>, vector<8x128xf32>
    tpu.vector_store %arg5[%c0_7, %c0_8], %13 {strides = array<i32>} : memref<8x128xf32, #tpu.memory_space<vmem>>, vector<8x128xf32>,
    return
  }
  func.func @transform_0(%arg0: i32) -> (i32, i32) {
    %c0_i32 = arith.constant 0 : i32
    %c0_i32_0 = arith.constant 0 : i32
    return %arg0, %c0_i32 : i32, i32
  }
  func.func @transform_1(%arg0: i32) -> (i32, i32) {
    %c0_i32 = arith.constant 0 : i32
    %c0_i32_0 = arith.constant 0 : i32
    %c0_i32_1 = arith.constant 0 : i32
    return %c0_i32, %c0_i32_0 : i32, i32
  }
  func.func @transform_2(%arg0: i32) -> (i32, i32) {
    %c0_i32 = arith.constant 0 : i32
    %c0_i32_0 = arith.constant 0 : i32
    %c0_i32_1 = arith.constant 0 : i32
    return %c0_i32, %c0_i32_0 : i32, i32
  }
  func.func @transform_3(%arg0: i32) -> (i32, i32) {
    %c0_i32 = arith.constant 0 : i32
    %c0_i32_0 = arith.constant 0 : i32
    %c0_i32_1 = arith.constant 0 : i32
    return %c0_i32, %c0_i32_0 : i32, i32
  }
  func.func @transform_4(%arg0: i32) -> (i32, i32) {
    %c0_i32 = arith.constant 0 : i32
    %c0_i32_0 = arith.constant 0 : i32
    return %arg0, %c0_i32 : i32, i32
  }
}

</mosaic_0001>

<bundles_post_ra>
// kernel: tpu_custom_call.1
= control target key start
LH: loop header
LB: loop body
LE: loop exit
PB: predicated region body
PF: predicated region fallthrough
CT: control target
= control target key end

     0   :  { %9 = vsyncpa [#allocation3], 0  ;;  %s1040_s0 = inlined_call_operand.hbm [shape: f32[16,32], index: 0, kind: input, shape index: {}]   ;;  %s1041_s1 = inlined_call_operand.hbm [shape: f32[32,512], index: 1, kind: input, shape index: {}]   ;;  %s1042_s2 = inlined_call_operand.hbm [shape: f32[8,512], index: 2, kind: input, shape index: {}]   ;;  %s1043_s3 = inlined_call_operand.hbm [shape: f32[8,128], index: 3, kind: input, shape index: {}]   ;;  %s1044_s4 = inlined_call_operand.hbm [shape: f32[16,128], index: 4, kind: output, shape index: {}]  }
   0x1   :  { %11 = vsyncpa [#allocation3 + $0x1], 0 }
   0x2   :  { %12 = vsyncpa [#allocation6], 0 }
   0x3   :  { %13 = vsyncpa [#allocation9], 0 }
   0x4   :  { %14 = vsyncpa [#allocation4], 0 }
   0x5   :  { %16 = vsyncpa [#allocation4 + $0x1], 0  ;;  %s856_s15 = smov 0   ;;  %s858_s16 = smov 0  }
   0x6   :  { %s860_s17 = smov 0   ;;  %s862_s18 = smov 0  }
   0x7 LB: > { %s877_s19 = sadd.s32 4294967295, %s821_s18   ;;  %s543_s20 = sadd.s32 4294967294, %s821_s18   ;;  %s821_s18 = sphi %s862_s18, %s1068_s18   ;;  %s817_s17 = sphi %s860_s17, %s1067_s17   ;;  %s813_s16 = sphi %s858_s16, %s1066_s16   ;;  %s809_s15 = sphi %s856_s15, %s1065_s15  }
   0x8   : > { %p42_p0 = scmp.ne.s32.totalorder %s813_s16, %s809_s15  ;;  %p1045_p1 = scmp.eq.s32.totalorder %s877_s19, 0 }
   0x9   : > { %p135_p3 = scmp.eq.s32.totalorder %s543_s20, 1  ;;  %p544_p5 = scmp.ge.s32.totalorder %s821_s18, 1 }
   0xa   : > { %p886_p4 = por %p1045_p1, %p42_p0  ;;  %p142_p7 = scmp.lt.s32.totalorder %s821_s18, 3 }
   0xb   : > { %p891_p6 = por %p135_p3, %p42_p0  ;;  %s823_s24 = smov [#allocation5]  }
   0xc   : > { %s1049_s21 = scalar_select %p886_p4, 1, 0 }
   0xd   : > { %s1050_s22 = scalar_select %p891_p6, 1, 0 }
   0xe   : > { %p896_p8 = pnand %p544_p5, %p142_p7  ;;  %s154_s25 = sshll.u32 %s823_s24, 4  ;;  %s155_s25 = int_to_ptr.vmem [resolvable:$true] %s154_s25 }
   0xf   : > { %s824_s27 = smov [#allocation7]   ;;  %s825_s29 = smov [#allocation8]  }
  0x10   : > { %s1051_s23 = scalar_select %p896_p8, 1, 0 }
  0x11   : > { %p579_p9 = pneg %p896_p8  ;;  %s168_s28 = sshll.u32 %s824_s27, 4  ;;  %s169_s28 = int_to_ptr.vmem [resolvable:$true] %s168_s28 }
  0x12   : > { %s179_s30 = sshll.u32 %s825_s29, 4  ;;  %s654_s5 = scalar_lea.vmem %s155_s25, 2048  ;;  %s180_s30 = int_to_ptr.vmem [resolvable:$true] %s179_s30 }
  0x13   : > { %p905_p11 = pnand %p579_p9, %p1045_p1  ;;  %p655_p13 = scmp.ne.s32.totalorder %s155_s25, %s654_s5 }
  0x14   : > { %p662_p5 = scmp.lt.s32.totalorder %s155_s25, %s155_s25  ;;  %p663_p7 = scmp.lt.s32.totalorder %s654_s5, %s654_s5 }
  0x15   : > { %p645_p12 = pneg %p905_p11 }
  0x16   : > { %p664_p9 = por %p663_p7, %p662_p5 }
  0x17   : > { %p657_p0 = pnand %p655_p13, %p645_p12 }
  0x19   : > { %p658_p3 = pneg %p657_p0 }
  0x1b   : > { %p665_p10 = pnand %p664_p9, %p658_p3 }
  0x1d   : > { %668 = shalt.err (!%p665_p10)
}
  0x1e   : > { %s826_s6 = smov 512   ;;  %s827_s7 = smov 32  }
  0x1f   : > { %582 = dma.hbm_to_vmem [thread:$0]  (!%p905_p11), %s1041_s1, 2048, %s155_s25, [#allocation6], %s826_s6, %s826_s6, %s827_s7  }
  0x20   : > { %s680_s10 = scalar_lea.vmem %s169_s28, 512  ;;  %p688_p2 = scmp.lt.s32.totalorder %s169_s28, %s169_s28 }
  0x21   : > { %p681_p1 = scmp.ne.s32.totalorder %s169_s28, %s680_s10  ;;  %p689_p6 = scmp.lt.s32.totalorder %s680_s10, %s680_s10 }
  0x23   : > { %p683_p13 = pnand %p681_p1, %p645_p12  ;;  %p690_p5 = por %p689_p6, %p688_p2 }
  0x25   : > { %p684_p0 = pneg %p683_p13 }
  0x27   : > { %p691_p3 = pnand %p690_p5, %p684_p0 }
  0x29   : > { %694 = shalt.err (!%p691_p3)
}
  0x2a   : > { %585 = dma.hbm_to_vmem [thread:$0]  (!%p905_p11), %s1042_s2, 512, %s169_s28, [#allocation6]  }
  0x2b   : > { %s706_s13 = scalar_lea.vmem %s180_s30, 128  ;;  %p714_p9 = scmp.lt.s32.totalorder %s180_s30, %s180_s30 }
  0x2c   : > { %p707_p10 = scmp.ne.s32.totalorder %s180_s30, %s706_s13  ;;  %p715_p13 = scmp.lt.s32.totalorder %s706_s13, %s706_s13 }
  0x2e   : > { %p709_p7 = pnand %p707_p10, %p645_p12  ;;  %p716_p4 = por %p715_p13, %p714_p9 }
  0x30   : > { %p710_p1 = pneg %p709_p7 }
  0x32   : > { %p717_p2 = pnand %p716_p4, %p710_p1 }
  0x34   : > { %720 = shalt.err (!%p717_p2)
}
  0x35   : > { %588 = dma.hbm_to_vmem [thread:$0]  (!%p905_p11), %s1043_s3, 128, %s180_s30, [#allocation9]  }
  0x36   : > { %s936_s24 = sadd.s32 1, %s821_s18   ;;  %s29_s26 = sadd.s32 1, %s817_s17 }
  0x37   : > { %s26_s25 = ssub.s32 %s821_s18, %s936_s24  ;;  %p36_p6 = scmp.ne.s32.totalorder %s817_s17, %s813_s16 }
  0x38   : > { %p27_p4 = scmp.eq.s32.totalorder %s26_s25, 0  ;;  %p37_p12 = scmp.eq.s32.totalorder %s821_s18, 0 }
  0x39   : > { %p600_p0 = scmp.lt.s32.totalorder %s821_s18, 2  ;;  %p1053_p3 = scmp.eq.s32.totalorder %s877_s19, 1 }
  0x3a   : > { %s946_s27 = scalar_select %p27_p4, %s817_s17, %s29_s26  }
  0x3b   : > { %p38_p5 = por %p37_p12, %p36_p6  ;;  %p950_p10 = por %p1053_p3, %p36_p6 }
  0x3c   : > { %s190_s29 = sand.u32 1, %s817_s17   ;;  %s550_s5 = sshll.u32 %s821_s18, 7 }
  0x3d   : > { %s1054_s28 = scalar_select %p950_p10, 1, 0 }
  0x3e   : > { %s549_s30 = sshll.u32 %s190_s29, 3  ;;  %s959_s8 = scalar_lea.hbm %s1040_s0, %s550_s5 }
  0x3f   : > { %s194_s9 = scalar_lea.vmem [#allocation2], %s549_s30  ;;  %p961_p11 = pnand %p600_p0, %p38_p5 }
  0x40   : > { %s201_s10 = sshll.u32 %s194_s9, 4  ;;  %s191_s12 = scalar_lea.sflag [#allocation3], %s190_s29  ;;  %s202_s10 = int_to_ptr.vmem [resolvable:$true] %s201_s10 }
  0x41   : > { %s721_s13 = scalar_lea.hbm %s959_s8, 128  ;;  %p723_p1 = pneg %p961_p11 }
  0x42   : > { %p722_p7 = scmp.ne.s32.totalorder %s959_s8, %s721_s13  ;;  %s726_s25 = scalar_lea.hbm %s1040_s0, 256 }
  0x43   : > { %p727_p2 = scmp.lt.s32.totalorder %s959_s8, %s1040_s0  ;;  %p728_p4 = scmp.lt.s32.totalorder %s726_s25, %s721_s13 }
  0x44   : > { %p724_p9 = pnand %p723_p1, %p722_p7 }
  0x45   : > { %p729_p6 = por %p728_p4, %p727_p2 }
  0x46   : > { %p725_p13 = pneg %p724_p9 }
  0x48   : > { %p730_p12 = pnand %p729_p6, %p725_p13 }
  0x4a   : > { %733 = shalt.err (!%p730_p12)
}
  0x4b   : > { %s734_s30 = scalar_lea.vmem %s202_s10, 128  ;;  %s828_s29 = smov [#allocation2]  }
  0x4c   : > { %p735_p0 = scmp.ne.s32.totalorder %s202_s10, %s734_s30  ;;  %s739_s6 = sshll.u32 %s828_s29, 4  ;;  %s740_s6 = int_to_ptr.vmem [resolvable:$false] %s739_s6 }
  0x4d   : > { %s741_s7 = scalar_lea.vmem %s740_s6, 256  ;;  %p742_p7 = scmp.lt.s32.totalorder %s202_s10, %s740_s6 }
  0x4e   : > { %p737_p5 = pnand %p735_p0, %p723_p1  ;;  %p743_p9 = scmp.lt.s32.totalorder %s741_s7, %s734_s30 }
  0x50   : > { %p738_p3 = pneg %p737_p5  ;;  %p744_p10 = por %p743_p9, %p742_p7 }
  0x52   : > { %p745_p8 = pnand %p744_p10, %p738_p3 }
  0x54   : > { %748 = shalt.err (!%p745_p8)
}
  0x55   : > { %592 = dma.hbm_to_vmem [thread:$0]  (!%p961_p11), %s959_s8, 128, %s202_s10, %s191_s12  }
  0x56   : > { %p1056_p13 = scmp.ne.s32.totalorder %s1051_s23, 0 }
  0x57   : > { %s982_s9 = sand.u32 (!%p1056_p13), 1, %s813_s16   ;;  %p1057_p8 = scmp.ne.s32.totalorder (!%p1056_p13), %s1049_s21, 0 }
  0x58   : > { %210 = sbr.rel (%p1056_p13) target bundleno = 326 (0x146), region = 36  ;;  %s552_s13 = sshll.u32 (!%p1056_p13), %s982_s9, 3 }
  0x59   : > { %s213_s14 = scalar_lea.sflag (!%p1056_p13), [#allocation3], %s982_s9  ;;  %s988_s20 = scalar_lea.vmem (!%p1056_p13), [#allocation2], %s552_s13 }
  0x5d   : > { %792 = dma.done.wait (%p1057_p8), %s213_s14, 128  }
  0x5e   : > { %794 = vsyncadd (%p1057_p8), %s213_s14, 4294967168  ;;  %p1058_p10 = scmp.eq.s32.totalorder %s877_s19, 0 }
  0x60   : > { %796 = dma.done.wait (%p1058_p10), [#allocation6], 2560   ;;  %p1059_p11 = pmov %p1058_p10 }
  0x61   : > { %p1060_p1 = pmov %p1058_p10 }
  0x62   : > { %798 = vsyncadd (%p1059_p11), [#allocation6], 4294964736 }
  0x63   : > { %800 = dma.done.wait (%p1060_p1), [#allocation9], 128   ;;  %p1061_p2 = pmov %p1060_p1 }
  0x64   : > { %v829_v0 = vmov 0.0   ;;  %v267_v1 = vld [vmem:[#allocation5 + $0x68] sm:$0xff]  ;;  %v266_v2 = vld [vmem:[#allocation5 + $0x60] sm:$0xff]  ;;  %v269_v4 = vld [vmem:[#allocation5 + $0x78] sm:$0xff]  ;;  %vm270_vm0 = vcmask 261120   ;;  %s560_s21 = sshll.u32 %s877_s19, 7 }
  0x65   : > { %802 = vsyncadd (%p1061_p2), [#allocation9], 4294967168  ;;  %338 = vmatprep.mubr.f32.mxu0 %v829_v0  ;;  %409 = vmatprep.mubr.f32.mxu1 %v829_v0  ;;  %v263_v3 = vld [vmem:[#allocation5 + $0x48] sm:$0xff]  ;;  %v262_v5 = vld [vmem:[#allocation5 + $0x40] sm:$0xff]  ;;  %s252_s23 = scalar_lea.vmem [#allocation10], %s552_s13  ;;  %s442_s12 = scalar_lea.hbm %s1044_s4, %s560_s21 }
  0x66   : > { %298 = vmatprep.subr.mxu0 %v267_v1  ;;  %v268_v6 = vld [vmem:[#allocation5 + $0x70] sm:$0xff]  ;;  %369 = vmatprep.subr.mxu1 %v269_v4  ;;  %v259_v7 = vld [vmem:[#allocation5 + $0x28] sm:$0xff]  ;;  %v265_v8 = vld [vmem:[#allocation5 + $0x58] sm:$0xff]  ;;  %s444_s8 = sshll.u32 %s252_s23, 4  ;;  %s431_s25 = scalar_lea.sflag [#allocation4], %s982_s9  ;;  %s445_s8 = int_to_ptr.vmem [resolvable:$true] %s444_s8 }
  0x67   : > { %299 = vmatpush1.msra.mxu0 %v266_v2  ;;  %370 = vmatpush1.msra.mxu1 %v268_v6  ;;  %v258_v9 = vld [vmem:[#allocation5 + $0x20] sm:$0xff]  ;;  %v264_v10 = vld [vmem:[#allocation5 + $0x50] sm:$0xff]  ;;  %v261_v11 = vld [vmem:[#allocation5 + $0x38] sm:$0xff]  ;;  %s749_s26 = scalar_lea.vmem %s445_s8, 128  ;;  %p1062_p6 = scmp.ne.s32.totalorder %s1054_s28, 0 }
  0x68   : > { %300 = vmatprep.subr.mxu0 %v263_v3  ;;  %371 = vmatprep.subr.mxu1 %v265_v8  ;;  %v255_v12 = vld [vmem:[#allocation5 + $0x8] sm:$0xff]  ;;  %v260_v13 = vld [vmem:[#allocation5 + $0x30] sm:$0xff]  ;;  %v254_v14 = vld [vmem:[#allocation5] sm:$0xff]  ;;  %p750_p4 = scmp.ne.s32.totalorder %s445_s8, %s749_s26  ;;  %s830_s5 = smov [#allocation10]  }
  0x69   : > { %301 = vmatpush1.msra.mxu0 %v262_v5  ;;  %372 = vmatpush1.msra.mxu1 %v264_v10  ;;  %v257_v15 = vld [vmem:[#allocation5 + $0x18] sm:$0xff]  ;;  %v256_v17 = vld [vmem:[#allocation5 + $0x10] sm:$0xff]  ;;  %v416_v18 = vld [vmem:[#allocation7] sm:$0xff]  ;;  %s753_s19 = sshll.u32 %s830_s5, 4  ;;  %s754_s19 = int_to_ptr.vmem [resolvable:$false] %s753_s19 }
  0x6a   : > { %302 = vmatprep.subr.mxu0 %v259_v7  ;;  %373 = vmatprep.subr.mxu1 %v261_v11  ;;  %v253_v16 = vld [vmem:[%s988_s20] sm:$0xff]  ;;  %v424_v20 = vld [vmem:[#allocation8] sm:$0xff]  ;;  %v417_v21 = vld [vmem:[#allocation7 + $0x8] sm:$0xff]  ;;  %p751_p12 = pnand %p750_p4, %p1062_p6  ;;  %s755_s30 = scalar_lea.vmem %s754_s19, 256 }
  0x6b   : > { %303 = vmatpush1.msra.mxu0 %v258_v9  ;;  %374 = vmatpush1.msra.mxu1 %v260_v13  ;;  %v418_v22 = vld [vmem:[#allocation7 + $0x10] sm:$0xff]  ;;  %v419_v30 = vld [vmem:[#allocation7 + $0x18] sm:$0xff]  ;;  %p756_p5 = scmp.lt.s32.totalorder %s445_s8, %s754_s19  ;;  %p757_p3 = scmp.lt.s32.totalorder %s755_s30, %s749_s26 }
  0x6c   : > { %304 = vmatprep.subr.mxu0 %v255_v12  ;;  %375 = vmatprep.subr.mxu1 %v257_v15  ;;  %p752_p0 = pneg %p751_p12 }
  0x6d   : > { %305 = vmatpush1.msra.mxu0 %v254_v14  ;;  %376 = vmatpush1.msra.mxu1 %v256_v17  ;;  %p758_p7 = por %p757_p3, %p756_p5 }
  0x6e   : > { %557 = vmatmul.mubr.msk.f32.vlgmr.msra.gmra.mxu0 %vm270_vm0, %v253_v16  ;;  %558 = vmatmul.mubr.msk.f32.vlgmr.msra.gmra.mxu1 %vm270_vm0, %v253_v16 }
  0x6f   : > { %p759_p9 = pnand %p758_p7, %p752_p0 }
 0x12e   : > { %v340_v19 = vpop.f32.mrf.mxu0  ;;  %v411_v24 = vpop.f32.mrf.mxu1 }
 0x12f   : > { %v420_v23 = vmul.f32 %v416_v18, %v340_v19  ;;  %v422_v28 = vmul.f32 %v418_v22, %v411_v24 }
 0x130   : > { %v342_v25 = vpop.f32.mrf.mxu0  ;;  %v413_v29 = vpop.f32.mrf.mxu1 }
 0x131   : > { %v425_v26 = vadd.f32 %v424_v20, %v420_v23  ;;  %v421_v27 = vmul.f32 %v417_v21, %v342_v25  ;;  %v423_v33 = vmul.f32 %v419_v30, %v413_v29 }
 0x133   : > { %v426_v31 = vadd.f32 %v425_v26, %v421_v27 }
 0x135   : > { %v427_v32 = vadd.f32 %v426_v31, %v422_v28 }
 0x137   : > { %v428_v34 = vadd.f32 %v427_v32, %v423_v33 }
 0x139   : > { %429 = vst [vmem:[%s252_s23] sm:$0xff] %v428_v34 }
 0x13a   : > { %762 = shalt.err (!%p759_p9)
}
 0x13b   : > { %s763_s29 = scalar_lea.hbm %s442_s12, 128  ;;  %s767_s9 = scalar_lea.hbm %s1044_s4, 256 }
 0x13c   : > { %p764_p13 = scmp.ne.s32.totalorder %s442_s12, %s763_s29  ;;  %p768_p11 = scmp.lt.s32.totalorder %s442_s12, %s1044_s4 }
 0x13d   : > { %p769_p1 = scmp.lt.s32.totalorder %s767_s9, %s763_s29 }
 0x13e   : > { %p765_p8 = pnand %p764_p13, %p1062_p6 }
 0x13f   : > { %p770_p2 = por %p769_p1, %p768_p11 }
 0x140   : > { %p766_p10 = pneg %p765_p8 }
 0x142   : > { %p771_p4 = pnand %p770_p2, %p766_p10 }
 0x144   : > { %774 = shalt.err (!%p771_p4)
}
 0x145   : > { %577 = dma.vmem_to_hbm [thread:$0]  (%p1062_p6), %s445_s8, 128, %s442_s12, %s431_s25  }
 0x146 PF: > { %s456_s20 = sand.u32 1, %s809_s15   ;;  %p1063_p12 = scmp.ne.s32.totalorder %s1050_s22, 0 }
 0x147   : > { %p1064_p0 = scmp.ge.s32.totalorder %s821_s18, 2  ;;  %s457_s21 = scalar_lea.sflag [#allocation4], %s456_s20 }
 0x149   : > { %p594_p5 = pnand %p1064_p0, %p1063_p12 }
 0x14b   : > { %p595_p3 = pneg %p594_p5 }
 0x14d   : > { %804 = dma.done.wait (%p595_p3), %s457_s21, 128  }
 0x14e   : > { %806 = vsyncadd (%p595_p3), %s457_s21, 4294967168  ;;  %p19_p7 = scmp.ge.s32.totalorder %s936_s24, 4   ;;  %s1065_s15 = smov %s813_s16 }
 0x14f   : > { %s1066_s16 = smov %s817_s17  ;;  %s1067_s17 = smov %s946_s27 }
 0x150   : > { %s1068_s18 = smov %s936_s24  ;;  %21 = sbr.rel (!%p19_p7) target bundleno = 7 (0x7), region = 93 }
 0x155   :  { %462 = vsyncpa [#allocation3], 1 }
 0x156   :  { %464 = vsyncpa [#allocation3 + $0x1], 1 }
 0x157   :  { %465 = vsyncpa [#allocation6], 1 }
 0x158   :  { %466 = vsyncpa [#allocation9], 1 }
 0x159   :  { %467 = vsyncpa [#allocation4], 1 }
 0x15a   :  { %469 = vsyncpa [#allocation4 + $0x1], 1 }

// kernel: tpu_custom_call.1
= control target key start
LH: loop header
LB: loop body
LE: loop exit
PB: predicated region body
PF: predicated region fallthrough
CT: control target
= control target key end

     0   :  { %9 = vsyncpa [#allocation3], 0  ;;  %s1040_s0 = inlined_call_operand.hbm [shape: f32[16,32], index: 0, kind: input, shape index: {}]   ;;  %s1041_s1 = inlined_call_operand.hbm [shape: f32[32,512], index: 1, kind: input, shape index: {}]   ;;  %s1042_s2 = inlined_call_operand.hbm [shape: f32[8,512], index: 2, kind: input, shape index: {}]   ;;  %s1043_s3 = inlined_call_operand.hbm [shape: f32[8,128], index: 3, kind: input, shape index: {}]   ;;  %s1044_s4 = inlined_call_operand.hbm [shape: f32[16,128], index: 4, kind: output, shape index: {}]  }
   0x1   :  { %11 = vsyncpa [#allocation3 + $0x1], 0 }
   0x2   :  { %12 = vsyncpa [#allocation6], 0 }
   0x3   :  { %13 = vsyncpa [#allocation9], 0 }
   0x4   :  { %14 = vsyncpa [#allocation4], 0 }
   0x5   :  { %16 = vsyncpa [#allocation4 + $0x1], 0  ;;  %s856_s15 = smov 0   ;;  %s858_s16 = smov 0  }
   0x6   :  { %s860_s17 = smov 0   ;;  %s862_s18 = smov 0  }
   0x7 LB: > { %s877_s19 = sadd.s32 4294967295, %s821_s18   ;;  %s543_s20 = sadd.s32 4294967294, %s821_s18   ;;  %s821_s18 = sphi %s862_s18, %s1068_s18   ;;  %s817_s17 = sphi %s860_s17, %s1067_s17   ;;  %s813_s16 = sphi %s858_s16, %s1066_s16   ;;  %s809_s15 = sphi %s856_s15, %s1065_s15  }
   0x8   : > { %p42_p0 = scmp.ne.s32.totalorder %s813_s16, %s809_s15  ;;  %p1045_p1 = scmp.eq.s32.totalorder %s877_s19, 0 }
   0x9   : > { %p135_p3 = scmp.eq.s32.totalorder %s543_s20, 1  ;;  %p544_p5 = scmp.ge.s32.totalorder %s821_s18, 1 }
   0xa   : > { %p886_p4 = por %p1045_p1, %p42_p0  ;;  %p142_p7 = scmp.lt.s32.totalorder %s821_s18, 3 }
   0xb   : > { %p891_p6 = por %p135_p3, %p42_p0  ;;  %s823_s24 = smov [#allocation5]  }
   0xc   : > { %s1049_s21 = scalar_select %p886_p4, 1, 0 }
   0xd   : > { %s1050_s22 = scalar_select %p891_p6, 1, 0 }
   0xe   : > { %p896_p8 = pnand %p544_p5, %p142_p7  ;;  %s154_s25 = sshll.u32 %s823_s24, 4  ;;  %s155_s25 = int_to_ptr.vmem [resolvable:$true] %s154_s25 }
   0xf   : > { %s824_s27 = smov [#allocation7]   ;;  %s825_s29 = smov [#allocation8]  }
  0x10   : > { %s1051_s23 = scalar_select %p896_p8, 1, 0 }
  0x11   : > { %p579_p9 = pneg %p896_p8  ;;  %s168_s28 = sshll.u32 %s824_s27, 4  ;;  %s169_s28 = int_to_ptr.vmem [resolvable:$true] %s168_s28 }
  0x12   : > { %s179_s30 = sshll.u32 %s825_s29, 4  ;;  %s654_s5 = scalar_lea.vmem %s155_s25, 2048  ;;  %s180_s30 = int_to_ptr.vmem [resolvable:$true] %s179_s30 }
  0x13   : > { %p905_p11 = pnand %p579_p9, %p1045_p1  ;;  %p655_p13 = scmp.ne.s32.totalorder %s155_s25, %s654_s5 }
  0x14   : > { %p662_p5 = scmp.lt.s32.totalorder %s155_s25, %s155_s25  ;;  %p663_p7 = scmp.lt.s32.totalorder %s654_s5, %s654_s5 }
  0x15   : > { %p645_p12 = pneg %p905_p11 }
  0x16   : > { %p664_p9 = por %p663_p7, %p662_p5 }
  0x17   : > { %p657_p0 = pnand %p655_p13, %p645_p12 }
  0x19   : > { %p658_p3 = pneg %p657_p0 }
  0x1b   : > { %p665_p10 = pnand %p664_p9, %p658_p3 }
  0x1d   : > { %668 = shalt.err (!%p665_p10)
}
  0x1e   : > { %s826_s6 = smov 512   ;;  %s827_s7 = smov 32  }
  0x1f   : > { %582 = dma.hbm_to_vmem [thread:$0]  (!%p905_p11), %s1041_s1, 2048, %s155_s25, [#allocation6], %s826_s6, %s826_s6, %s827_s7  }
  0x20   : > { %s680_s10 = scalar_lea.vmem %s169_s28, 512  ;;  %p688_p2 = scmp.lt.s32.totalorder %s169_s28, %s169_s28 }
  0x21   : > { %p681_p1 = scmp.ne.s32.totalorder %s169_s28, %s680_s10  ;;  %p689_p6 = scmp.lt.s32.totalorder %s680_s10, %s680_s10 }
  0x23   : > { %p683_p13 = pnand %p681_p1, %p645_p12  ;;  %p690_p5 = por %p689_p6, %p688_p2 }
  0x25   : > { %p684_p0 = pneg %p683_p13 }
  0x27   : > { %p691_p3 = pnand %p690_p5, %p684_p0 }
  0x29   : > { %694 = shalt.err (!%p691_p3)
}
  0x2a   : > { %585 = dma.hbm_to_vmem [thread:$0]  (!%p905_p11), %s1042_s2, 512, %s169_s28, [#allocation6]  }
  0x2b   : > { %s706_s13 = scalar_lea.vmem %s180_s30, 128  ;;  %p714_p9 = scmp.lt.s32.totalorder %s180_s30, %s180_s30 }
  0x2c   : > { %p707_p10 = scmp.ne.s32.totalorder %s180_s30, %s706_s13  ;;  %p715_p13 = scmp.lt.s32.totalorder %s706_s13, %s706_s13 }
  0x2e   : > { %p709_p7 = pnand %p707_p10, %p645_p12  ;;  %p716_p4 = por %p715_p13, %p714_p9 }
  0x30   : > { %p710_p1 = pneg %p709_p7 }
  0x32   : > { %p717_p2 = pnand %p716_p4, %p710_p1 }
  0x34   : > { %720 = shalt.err (!%p717_p2)
}
  0x35   : > { %588 = dma.hbm_to_vmem [thread:$0]  (!%p905_p11), %s1043_s3, 128, %s180_s30, [#allocation9]  }
  0x36   : > { %s936_s24 = sadd.s32 1, %s821_s18   ;;  %s29_s26 = sadd.s32 1, %s817_s17 }
  0x37   : > { %s26_s25 = ssub.s32 %s821_s18, %s936_s24  ;;  %p36_p6 = scmp.ne.s32.totalorder %s817_s17, %s813_s16 }
  0x38   : > { %p27_p4 = scmp.eq.s32.totalorder %s26_s25, 0  ;;  %p37_p12 = scmp.eq.s32.totalorder %s821_s18, 0 }
  0x39   : > { %p600_p0 = scmp.lt.s32.totalorder %s821_s18, 2  ;;  %p1053_p3 = scmp.eq.s32.totalorder %s877_s19, 1 }
  0x3a   : > { %s946_s27 = scalar_select %p27_p4, %s817_s17, %s29_s26  }
  0x3b   : > { %p38_p5 = por %p37_p12, %p36_p6  ;;  %p950_p10 = por %p1053_p3, %p36_p6 }
  0x3c   : > { %s190_s29 = sand.u32 1, %s817_s17   ;;  %s550_s5 = sshll.u32 %s821_s18, 7 }
  0x3d   : > { %s1054_s28 = scalar_select %p950_p10, 1, 0 }
  0x3e   : > { %s549_s30 = sshll.u32 %s190_s29, 3  ;;  %s959_s8 = scalar_lea.hbm %s1040_s0, %s550_s5 }
  0x3f   : > { %s194_s9 = scalar_lea.vmem [#allocation2], %s549_s30  ;;  %p961_p11 = pnand %p600_p0, %p38_p5 }
  0x40   : > { %s201_s10 = sshll.u32 %s194_s9, 4  ;;  %s191_s12 = scalar_lea.sflag [#allocation3], %s190_s29  ;;  %s202_s10 = int_to_ptr.vmem [resolvable:$true] %s201_s10 }
  0x41   : > { %s721_s13 = scalar_lea.hbm %s959_s8, 128  ;;  %p723_p1 = pneg %p961_p11 }
  0x42   : > { %p722_p7 = scmp.ne.s32.totalorder %s959_s8, %s721_s13  ;;  %s726_s25 = scalar_lea.hbm %s1040_s0, 256 }
  0x43   : > { %p727_p2 = scmp.lt.s32.totalorder %s959_s8, %s1040_s0  ;;  %p728_p4 = scmp.lt.s32.totalorder %s726_s25, %s721_s13 }
  0x44   : > { %p724_p9 = pnand %p723_p1, %p722_p7 }
  0x45   : > { %p729_p6 = por %p728_p4, %p727_p2 }
  0x46   : > { %p725_p13 = pneg %p724_p9 }
  0x48   : > { %p730_p12 = pnand %p729_p6, %p725_p13 }
  0x4a   : > { %733 = shalt.err (!%p730_p12)
}
  0x4b   : > { %s734_s30 = scalar_lea.vmem %s202_s10, 128  ;;  %s828_s29 = smov [#allocation2]  }
  0x4c   : > { %p735_p0 = scmp.ne.s32.totalorder %s202_s10, %s734_s30  ;;  %s739_s6 = sshll.u32 %s828_s29, 4  ;;  %s740_s6 = int_to_ptr.vmem [resolvable:$false] %s739_s6 }
  0x4d   : > { %s741_s7 = scalar_lea.vmem %s740_s6, 256  ;;  %p742_p7 = scmp.lt.s32.totalorder %s202_s10, %s740_s6 }
  0x4e   : > { %p737_p5 = pnand %p735_p0, %p723_p1  ;;  %p743_p9 = scmp.lt.s32.totalorder %s741_s7, %s734_s30 }
  0x50   : > { %p738_p3 = pneg %p737_p5  ;;  %p744_p10 = por %p743_p9, %p742_p7 }
  0x52   : > { %p745_p8 = pnand %p744_p10, %p738_p3 }
  0x54   : > { %748 = shalt.err (!%p745_p8)
}
  0x55   : > { %592 = dma.hbm_to_vmem [thread:$0]  (!%p961_p11), %s959_s8, 128, %s202_s10, %s191_s12  }
  0x56   : > { %p1056_p13 = scmp.ne.s32.totalorder %s1051_s23, 0 }
  0x57   : > { %s982_s9 = sand.u32 (!%p1056_p13), 1, %s813_s16   ;;  %p1057_p8 = scmp.ne.s32.totalorder (!%p1056_p13), %s1049_s21, 0 }
  0x58   : > { %210 = sbr.rel (%p1056_p13) target bundleno = 326 (0x146), region = 36  ;;  %s552_s13 = sshll.u32 (!%p1056_p13), %s982_s9, 3 }
  0x59   : > { %s213_s14 = scalar_lea.sflag (!%p1056_p13), [#allocation3], %s982_s9  ;;  %s988_s20 = scalar_lea.vmem (!%p1056_p13), [#allocation2], %s552_s13 }
  0x5d   : > { %792 = dma.done.wait (%p1057_p8), %s213_s14, 128  }
  0x5e   : > { %794 = vsyncadd (%p1057_p8), %s213_s14, 4294967168  ;;  %p1058_p10 = scmp.eq.s32.totalorder %s877_s19, 0 }
  0x60   : > { %796 = dma.done.wait (%p1058_p10), [#allocation6], 2560   ;;  %p1059_p11 = pmov %p1058_p10 }
  0x61   : > { %p1060_p1 = pmov %p1058_p10 }
  0x62   : > { %798 = vsyncadd (%p1059_p11), [#allocation6], 4294964736 }
  0x63   : > { %800 = dma.done.wait (%p1060_p1), [#allocation9], 128   ;;  %p1061_p2 = pmov %p1060_p1 }
  0x64   : > { %v829_v0 = vmov 0.0   ;;  %v267_v1 = vld [vmem:[#allocation5 + $0x68] sm:$0xff]  ;;  %v266_v2 = vld [vmem:[#allocation5 + $0x60] sm:$0xff]  ;;  %v269_v4 = vld [vmem:[#allocation5 + $0x78] sm:$0xff]  ;;  %vm270_vm0 = vcmask 261120   ;;  %s560_s21 = sshll.u32 %s877_s19, 7 }
  0x65   : > { %802 = vsyncadd (%p1061_p2), [#allocation9], 4294967168  ;;  %338 = vmatprep.mubr.f32.mxu0 %v829_v0  ;;  %409 = vmatprep.mubr.f32.mxu1 %v829_v0  ;;  %v263_v3 = vld [vmem:[#allocation5 + $0x48] sm:$0xff]  ;;  %v262_v5 = vld [vmem:[#allocation5 + $0x40] sm:$0xff]  ;;  %s252_s23 = scalar_lea.vmem [#allocation10], %s552_s13  ;;  %s442_s12 = scalar_lea.hbm %s1044_s4, %s560_s21 }
  0x66   : > { %298 = vmatprep.subr.mxu0 %v267_v1  ;;  %v268_v6 = vld [vmem:[#allocation5 + $0x70] sm:$0xff]  ;;  %369 = vmatprep.subr.mxu1 %v269_v4  ;;  %v259_v7 = vld [vmem:[#allocation5 + $0x28] sm:$0xff]  ;;  %v265_v8 = vld [vmem:[#allocation5 + $0x58] sm:$0xff]  ;;  %s444_s8 = sshll.u32 %s252_s23, 4  ;;  %s431_s25 = scalar_lea.sflag [#allocation4], %s982_s9  ;;  %s445_s8 = int_to_ptr.vmem [resolvable:$true] %s444_s8 }
  0x67   : > { %299 = vmatpush1.msra.mxu0 %v266_v2  ;;  %370 = vmatpush1.msra.mxu1 %v268_v6  ;;  %v258_v9 = vld [vmem:[#allocation5 + $0x20] sm:$0xff]  ;;  %v264_v10 = vld [vmem:[#allocation5 + $0x50] sm:$0xff]  ;;  %v261_v11 = vld [vmem:[#allocation5 + $0x38] sm:$0xff]  ;;  %s749_s26 = scalar_lea.vmem %s445_s8, 128  ;;  %p1062_p6 = scmp.ne.s32.totalorder %s1054_s28, 0 }
  0x68   : > { %300 = vmatprep.subr.mxu0 %v263_v3  ;;  %371 = vmatprep.subr.mxu1 %v265_v8  ;;  %v255_v12 = vld [vmem:[#allocation5 + $0x8] sm:$0xff]  ;;  %v260_v13 = vld [vmem:[#allocation5 + $0x30] sm:$0xff]  ;;  %v254_v14 = vld [vmem:[#allocation5] sm:$0xff]  ;;  %p750_p4 = scmp.ne.s32.totalorder %s445_s8, %s749_s26  ;;  %s830_s5 = smov [#allocation10]  }
  0x69   : > { %301 = vmatpush1.msra.mxu0 %v262_v5  ;;  %372 = vmatpush1.msra.mxu1 %v264_v10  ;;  %v257_v15 = vld [vmem:[#allocation5 + $0x18] sm:$0xff]  ;;  %v256_v17 = vld [vmem:[#allocation5 + $0x10] sm:$0xff]  ;;  %v416_v18 = vld [vmem:[#allocation7] sm:$0xff]  ;;  %s753_s19 = sshll.u32 %s830_s5, 4  ;;  %s754_s19 = int_to_ptr.vmem [resolvable:$false] %s753_s19 }
  0x6a   : > { %302 = vmatprep.subr.mxu0 %v259_v7  ;;  %373 = vmatprep.subr.mxu1 %v261_v11  ;;  %v253_v16 = vld [vmem:[%s988_s20] sm:$0xff]  ;;  %v424_v20 = vld [vmem:[#allocation8] sm:$0xff]  ;;  %v417_v21 = vld [vmem:[#allocation7 + $0x8] sm:$0xff]  ;;  %p751_p12 = pnand %p750_p4, %p1062_p6  ;;  %s755_s30 = scalar_lea.vmem %s754_s19, 256 }
  0x6b   : > { %303 = vmatpush1.msra.mxu0 %v258_v9  ;;  %374 = vmatpush1.msra.mxu1 %v260_v13  ;;  %v418_v22 = vld [vmem:[#allocation7 + $0x10] sm:$0xff]  ;;  %v419_v30 = vld [vmem:[#allocation7 + $0x18] sm:$0xff]  ;;  %p756_p5 = scmp.lt.s32.totalorder %s445_s8, %s754_s19  ;;  %p757_p3 = scmp.lt.s32.totalorder %s755_s30, %s749_s26 }
  0x6c   : > { %304 = vmatprep.subr.mxu0 %v255_v12  ;;  %375 = vmatprep.subr.mxu1 %v257_v15  ;;  %p752_p0 = pneg %p751_p12 }
  0x6d   : > { %305 = vmatpush1.msra.mxu0 %v254_v14  ;;  %376 = vmatpush1.msra.mxu1 %v256_v17  ;;  %p758_p7 = por %p757_p3, %p756_p5 }
  0x6e   : > { %557 = vmatmul.mubr.msk.f32.vlgmr.msra.gmra.mxu0 %vm270_vm0, %v253_v16  ;;  %558 = vmatmul.mubr.msk.f32.vlgmr.msra.gmra.mxu1 %vm270_vm0, %v253_v16 }
  0x6f   : > { %p759_p9 = pnand %p758_p7, %p752_p0 }
 0x12e   : > { %v340_v19 = vpop.f32.mrf.mxu0  ;;  %v411_v24 = vpop.f32.mrf.mxu1 }
 0x12f   : > { %v420_v23 = vmul.f32 %v416_v18, %v340_v19  ;;  %v422_v28 = vmul.f32 %v418_v22, %v411_v24 }
 0x130   : > { %v342_v25 = vpop.f32.mrf.mxu0  ;;  %v413_v29 = vpop.f32.mrf.mxu1 }
 0x131   : > { %v425_v26 = vadd.f32 %v424_v20, %v420_v23  ;;  %v421_v27 = vmul.f32 %v417_v21, %v342_v25  ;;  %v423_v33 = vmul.f32 %v419_v30, %v413_v29 }
 0x133   : > { %v426_v31 = vadd.f32 %v425_v26, %v421_v27 }
 0x135   : > { %v427_v32 = vadd.f32 %v426_v31, %v422_v28 }
 0x137   : > { %v428_v34 = vadd.f32 %v427_v32, %v423_v33 }
 0x139   : > { %429 = vst [vmem:[%s252_s23] sm:$0xff] %v428_v34 }
 0x13a   : > { %762 = shalt.err (!%p759_p9)
}
 0x13b   : > { %s763_s29 = scalar_lea.hbm %s442_s12, 128  ;;  %s767_s9 = scalar_lea.hbm %s1044_s4, 256 }
 0x13c   : > { %p764_p13 = scmp.ne.s32.totalorder %s442_s12, %s763_s29  ;;  %p768_p11 = scmp.lt.s32.totalorder %s442_s12, %s1044_s4 }
 0x13d   : > { %p769_p1 = scmp.lt.s32.totalorder %s767_s9, %s763_s29 }
 0x13e   : > { %p765_p8 = pnand %p764_p13, %p1062_p6 }
 0x13f   : > { %p770_p2 = por %p769_p1, %p768_p11 }
 0x140   : > { %p766_p10 = pneg %p765_p8 }
 0x142   : > { %p771_p4 = pnand %p770_p2, %p766_p10 }
 0x144   : > { %774 = shalt.err (!%p771_p4)
}
 0x145   : > { %577 = dma.vmem_to_hbm [thread:$0]  (%p1062_p6), %s445_s8, 128, %s442_s12, %s431_s25  }
 0x146 PF: > { %s456_s20 = sand.u32 1, %s809_s15   ;;  %p1063_p12 = scmp.ne.s32.totalorder %s1050_s22, 0 }
 0x147   : > { %p1064_p0 = scmp.ge.s32.totalorder %s821_s18, 2  ;;  %s457_s21 = scalar_lea.sflag [#allocation4], %s456_s20 }
 0x149   : > { %p594_p5 = pnand %p1064_p0, %p1063_p12 }
 0x14b   : > { %p595_p3 = pneg %p594_p5 }
 0x14d   : > { %804 = dma.done.wait (%p595_p3), %s457_s21, 128  }
 0x14e   : > { %806 = vsyncadd (%p595_p3), %s457_s21, 4294967168  ;;  %p19_p7 = scmp.ge.s32.totalorder %s936_s24, 4   ;;  %s1065_s15 = smov %s813_s16 }
 0x14f   : > { %s1066_s16 = smov %s817_s17  ;;  %s1067_s17 = smov %s946_s27 }
 0x150   : > { %s1068_s18 = smov %s936_s24  ;;  %21 = sbr.rel (!%p19_p7) target bundleno = 7 (0x7), region = 93 }
 0x155   :  { %462 = vsyncpa [#allocation3], 1 }
 0x156   :  { %464 = vsyncpa [#allocation3 + $0x1], 1 }
 0x157   :  { %465 = vsyncpa [#allocation6], 1 }
 0x158   :  { %466 = vsyncpa [#allocation9], 1 }
 0x159   :  { %467 = vsyncpa [#allocation4], 1 }
 0x15a   :  { %469 = vsyncpa [#allocation4 + $0x1], 1 }

</bundles_post_ra>
